<compile_context>
chip_gen: v5e
topology: v5e:2x2
jax: 0.10.0
libtpu: 0.0.40
codegen_flags: <defaults>
</compile_context>

<pallas_src>
import functools

import jax
import jax.numpy as jnp
from jax.experimental import pallas as pl
from jax.experimental.pallas import tpu as pltpu

LANE = 128        # padded feature width for every layer
N_LAYERS = 5      # obs -> 64 -> 128 -> 128 -> 128 -> num_actions
_TILE_CAP = 2048  # max batch-tile rows; working set stays ~3 MiB << VMEM
_STEP_ROWS = 128  # ~0.35 us per grid step expressed as row-equivalents


def _round_up(n, m):
    return ((n + m - 1) // m) * m


def _choose_tile(batch):
    """Pick the batch tile (static, from the traced shape).

    * tiny batches           -> one tile, one grid step.
    * medium batches (<=cap) -> exactly two grid steps (<=15 padded rows),
                                so both v7x TensorCores get work.
    * large batches          -> power-of-two tile minimizing padded rows
                                plus per-grid-step overhead.
    """
    b8 = _round_up(batch, 8)
    if b8 <= 256:
        return b8
    if b8 <= _TILE_CAP:
        return _round_up((batch + 1) // 2, 8)
    best_tile, best_cost = None, None
    for t in (2048, 1024, 512, 256, 128):
        b_pad = _round_up(batch, t)
        cost = b_pad + (b_pad // t) * _STEP_ROWS
        if best_cost is None or cost < best_cost:
            best_tile, best_cost = t, cost
    return best_tile


def actor_kernel(x_ref, w_ref, b_ref, out_ref):
    """One batch tile of the Actor MLP. All feature dims pre-padded to 128.

    x_ref : (TILE_B, 128) bf16
    w_ref : (5, 128, 128) bf16   (zero-padded, already transposed to (in,out))
    b_ref : (5, 1, 128)   f32    (zero-padded)
    out   : (TILE_B, 128) f32
    """
    h = x_ref[...]                                        # bf16
    # 4 hidden layers: Linear (bf16 MXU, f32 acc) + f32 Tanh.
    for i in range(N_LAYERS - 1):
        z = jnp.dot(h, w_ref[i], preferred_element_type=jnp.float32) + b_ref[i]
        h = jnp.tanh(z).astype(jnp.bfloat16)              # cast-at-the-dot
    # Output layer: Linear + Sigmoid (via tanh -> EUP slot).  Padded output
    # columns become sigmoid(0) = 0.5 and are sliced off in the wrapper.
    z = (jnp.dot(h, w_ref[N_LAYERS - 1], preferred_element_type=jnp.float32)
         + b_ref[N_LAYERS - 1])
    out_ref[...] = 0.5 * (jnp.tanh(0.5 * z) + 1.0)


def init_actor_params(key, num_observations, num_actions):
    """Grid_initializer semantics: Linear weights ~ N(0, 1), biases = 0.

    PyTorch Linear stores weight as (out, in) and computes x @ W.T + b; we
    store the transposed (in, out) matrix directly.  Entries are still
    i.i.d. N(0, 1), so the initialization distribution is identical.
    """
    dims = [num_observations, 64, 128, 128, 128, num_actions]
    params = []
    for i in range(N_LAYERS):
        key, sub = jax.random.split(key)
        w = jax.random.normal(sub, (dims[i], dims[i + 1]), dtype=jnp.float32)
        b = jnp.zeros((dims[i + 1],), dtype=jnp.float32)
        params.append((w, b))
    return params


def pack_actor_params(params):
    """Zero-pad each layer to 128 wide, stack, and cast weights to bf16."""
    w_stack, b_stack = [], []
    for w, b in params:
        k, n = w.shape
        w_stack.append(jnp.pad(w, ((0, LANE - k), (0, LANE - n))))
        b_stack.append(jnp.pad(b, (0, LANE - b.shape[0])))
    w_packed = jnp.stack(w_stack, axis=0).astype(jnp.bfloat16)   # (5,128,128)
    b_packed = jnp.stack(b_stack, axis=0)[:, None, :]            # (5,1,128) f32
    return w_packed, b_packed


@functools.partial(jax.jit, static_argnames=("num_actions",))
def actor_forward(x, w_packed, b_packed, *, num_actions):
    """Equivalent of Actor.forward(x)."""
    B, d_in = x.shape
    tile_b = _choose_tile(B)
    b_pad = _round_up(B, tile_b)

    # Input is cast to bf16 at the first dot anyway; storing it bf16 halves
    # the padding-dominated HBM read traffic.
    x_p = jnp.pad(x.astype(jnp.bfloat16),
                  ((0, b_pad - B), (0, LANE - d_in)))            # (b_pad, 128)

    flops = 2 * b_pad * N_LAYERS * LANE * LANE
    transcendentals = b_pad * N_LAYERS * LANE
    bytes_accessed = (2 * x_p.size                # bf16 in
                      + 2 * w_packed.size         # bf16 weights
                      + 4 * b_packed.size         # f32 biases
                      + 4 * b_pad * LANE)         # f32 out

    out = pl.pallas_call(
        actor_kernel,
        out_shape=jax.ShapeDtypeStruct((b_pad, LANE), jnp.float32),
        grid=(b_pad // tile_b,),
        in_specs=[
            pl.BlockSpec((tile_b, LANE), lambda i: (i, 0)),
            # Constant index_map -> weight/bias blocks stay VMEM resident.
            pl.BlockSpec((N_LAYERS, LANE, LANE), lambda i: (0, 0, 0)),
            pl.BlockSpec((N_LAYERS, 1, LANE), lambda i: (0, 0, 0)),
        ],
        out_specs=pl.BlockSpec((tile_b, LANE), lambda i: (i, 0)),
        compiler_params=pltpu.CompilerParams(
            dimension_semantics=("parallel",),
            vmem_limit_bytes=32 * 1024 * 1024),
        cost_estimate=pl.CostEstimate(
            flops=flops,
            transcendentals=transcendentals,
            bytes_accessed=bytes_accessed),
    )(x_p, w_packed, b_packed)

    return out[:B, :num_actions]


def actor_ref(x, params):
    """Pure-JAX reference with the kernel's precision model: bf16 matmul
    inputs, f32 accumulation, f32 tanh/sigmoid.  (A pure-f32 reference is not
    used for the assert because the N(0,1)-initialized network chaotically
    amplifies bf16 rounding across its 5 layers.)"""
    h = x
    for i, (w, b) in enumerate(params):
        z = jnp.dot(h.astype(jnp.bfloat16), w.astype(jnp.bfloat16),
                    preferred_element_type=jnp.float32) + b
        h = jnp.tanh(z) if i < len(params) - 1 else jax.nn.sigmoid(z)
    return h


if __name__ == "__main__":
    num_observations = 6
    num_actions = 2

    key = jax.random.PRNGKey(0)
    kx, kx2, kp = jax.random.split(key, 3)

    params = init_actor_params(kp, num_observations, num_actions)
    w_packed, b_packed = pack_actor_params(params)

    # Case 1: tiny batch (single grid step).
    x_small = jax.random.normal(kx, (8, num_observations), dtype=jnp.float32)
    out_small = jax.block_until_ready(
        actor_forward(x_small, w_packed, b_packed, num_actions=num_actions))
    ref_small = actor_ref(x_small, params)
    assert out_small.shape == (8, num_actions)
    assert jnp.allclose(out_small, ref_small, atol=1e-2, rtol=1e-2), \
        "mismatch vs reference (small batch)"

    # Case 2: batch not divisible by the tile (2-step grid + row padding).
    x_big = jax.random.normal(kx2, (300, num_observations), dtype=jnp.float32)
    out_big = jax.block_until_ready(
        actor_forward(x_big, w_packed, b_packed, num_actions=num_actions))
    ref_big = actor_ref(x_big, params)
    assert out_big.shape == (300, num_actions)
    assert jnp.allclose(out_big, ref_big, atol=1e-2, rtol=1e-2), \
        "mismatch vs reference (large batch)"

    print("KERNEL_OK")
</pallas_src>

<mosaic_0001>
module attributes {stable_mosaic.version = 11 : i64} {
  func.func @actor_kernel(%arg0: i32, %arg1: memref<8x128xbf16, #tpu.memory_space<vmem>>, %arg2: memref<5x128x128xbf16, #tpu.memory_space<vmem>>, %arg3: memref<5x1x128xf32, #tpu.memory_space<vmem>>, %arg4: memref<8x128xf32, #tpu.memory_space<vmem>>) attributes {dimension_semantics = [#tpu.dimension_semantics<parallel>], iteration_bounds = array<i64: 1>, scalar_prefetch = 0 : i64, scratch_operands = 0 : i64, tpu.core_type = #tpu.core_type<tc>, window_params = [{transform_indices = @transform_0, window_bounds = array<i64: 8, 128>}, {pipeline_mode = #tpu.pipeline_mode<synchronous>, transform_indices = @transform_1, window_bounds = array<i64: 5, 128, 128>}, {pipeline_mode = #tpu.pipeline_mode<synchronous>, transform_indices = @transform_2, window_bounds = array<i64: 5, 1, 128>}, {transform_indices = @transform_3, window_bounds = array<i64: 8, 128>}]} {
    %c0 = arith.constant 0 : index
    %c0_0 = arith.constant 0 : index
    %0 = vector.load %arg1[%c0, %c0_0] : memref<8x128xbf16, #tpu.memory_space<vmem>>, vector<8x128xbf16>
    %c0_1 = arith.constant 0 : index
    %c0_2 = arith.constant 0 : index
    %c0_3 = arith.constant 0 : index
    %1 = vector.load %arg2[%c0_1, %c0_2, %c0_3] : memref<5x128x128xbf16, #tpu.memory_space<vmem>>, vector<1x128x128xbf16>
    %2 = vector.shape_cast %1 : vector<1x128x128xbf16> to vector<128x128xbf16>
    %cst = arith.constant dense<0.000000e+00> : vector<8x128xf32>
    %3 = tpu.matmul %0, %2, %cst {dimension_numbers = #tpu.dot_dimension_numbers<[1], [0], [0], [1], [0, 0, 1, 1], [], []>} : vector<8x128xbf16>, vector<128x128xbf16>, vector<8x128xf32> -> vector<8x128xf32>
    %c0_4 = arith.constant 0 : index
    %c0_5 = arith.constant 0 : index
    %c0_6 = arith.constant 0 : index
    %4 = vector.load %arg3[%c0_4, %c0_5, %c0_6] : memref<5x1x128xf32, #tpu.memory_space<vmem>>, vector<1x1x128xf32>
    %5 = vector.shape_cast %4 : vector<1x1x128xf32> to vector<1x128xf32>
    %6 = vector.broadcast %5 : vector<1x128xf32> to vector<8x128xf32>
    %7 = arith.addf %3, %6 : vector<8x128xf32>
    %8 = math.tanh %7 : vector<8x128xf32>
    %9 = arith.truncf %8 : vector<8x128xf32> to vector<8x128xbf16>
    %c1 = arith.constant 1 : index
    %c0_7 = arith.constant 0 : index
    %c0_8 = arith.constant 0 : index
    %10 = vector.load %arg2[%c1, %c0_7, %c0_8] : memref<5x128x128xbf16, #tpu.memory_space<vmem>>, vector<1x128x128xbf16>
    %11 = vector.shape_cast %10 : vector<1x128x128xbf16> to vector<128x128xbf16>
    %cst_9 = arith.constant dense<0.000000e+00> : vector<8x128xf32>
    %12 = tpu.matmul %9, %11, %cst_9 {dimension_numbers = #tpu.dot_dimension_numbers<[1], [0], [0], [1], [0, 0, 1, 1], [], []>} : vector<8x128xbf16>, vector<128x128xbf16>, vector<8x128xf32> -> vector<8x128xf32>
    %c1_10 = arith.constant 1 : index
    %c0_11 = arith.constant 0 : index
    %c0_12 = arith.constant 0 : index
    %13 = vector.load %arg3[%c1_10, %c0_11, %c0_12] : memref<5x1x128xf32, #tpu.memory_space<vmem>>, vector<1x1x128xf32>
    %14 = vector.shape_cast %13 : vector<1x1x128xf32> to vector<1x128xf32>
    %15 = vector.broadcast %14 : vector<1x128xf32> to vector<8x128xf32>
    %16 = arith.addf %12, %15 : vector<8x128xf32>
    %17 = math.tanh %16 : vector<8x128xf32>
    %18 = arith.truncf %17 : vector<8x128xf32> to vector<8x128xbf16>
    %c2 = arith.constant 2 : index
    %c0_13 = arith.constant 0 : index
    %c0_14 = arith.constant 0 : index
    %19 = vector.load %arg2[%c2, %c0_13, %c0_14] : memref<5x128x128xbf16, #tpu.memory_space<vmem>>, vector<1x128x128xbf16>
    %20 = vector.shape_cast %19 : vector<1x128x128xbf16> to vector<128x128xbf16>
    %cst_15 = arith.constant dense<0.000000e+00> : vector<8x128xf32>
    %21 = tpu.matmul %18, %20, %cst_15 {dimension_numbers = #tpu.dot_dimension_numbers<[1], [0], [0], [1], [0, 0, 1, 1], [], []>} : vector<8x128xbf16>, vector<128x128xbf16>, vector<8x128xf32> -> vector<8x128xf32>
    %c2_16 = arith.constant 2 : index
    %c0_17 = arith.constant 0 : index
    %c0_18 = arith.constant 0 : index
    %22 = vector.load %arg3[%c2_16, %c0_17, %c0_18] : memref<5x1x128xf32, #tpu.memory_space<vmem>>, vector<1x1x128xf32>
    %23 = vector.shape_cast %22 : vector<1x1x128xf32> to vector<1x128xf32>
    %24 = vector.broadcast %23 : vector<1x128xf32> to vector<8x128xf32>
    %25 = arith.addf %21, %24 : vector<8x128xf32>
    %26 = math.tanh %25 : vector<8x128xf32>
    %27 = arith.truncf %26 : vector<8x128xf32> to vector<8x128xbf16>
    %c3 = arith.constant 3 : index
    %c0_19 = arith.constant 0 : index
    %c0_20 = arith.constant 0 : index
    %28 = vector.load %arg2[%c3, %c0_19, %c0_20] : memref<5x128x128xbf16, #tpu.memory_space<vmem>>, vector<1x128x128xbf16>
    %29 = vector.shape_cast %28 : vector<1x128x128xbf16> to vector<128x128xbf16>
    %cst_21 = arith.constant dense<0.000000e+00> : vector<8x128xf32>
    %30 = tpu.matmul %27, %29, %cst_21 {dimension_numbers = #tpu.dot_dimension_numbers<[1], [0], [0], [1], [0, 0, 1, 1], [], []>} : vector<8x128xbf16>, vector<128x128xbf16>, vector<8x128xf32> -> vector<8x128xf32>
    %c3_22 = arith.constant 3 : index
    %c0_23 = arith.constant 0 : index
    %c0_24 = arith.constant 0 : index
    %31 = vector.load %arg3[%c3_22, %c0_23, %c0_24] : memref<5x1x128xf32, #tpu.memory_space<vmem>>, vector<1x1x128xf32>
    %32 = vector.shape_cast %31 : vector<1x1x128xf32> to vector<1x128xf32>
    %33 = vector.broadcast %32 : vector<1x128xf32> to vector<8x128xf32>
    %34 = arith.addf %30, %33 : vector<8x128xf32>
    %35 = math.tanh %34 : vector<8x128xf32>
    %36 = arith.truncf %35 : vector<8x128xf32> to vector<8x128xbf16>
    %c4 = arith.constant 4 : index
    %c0_25 = arith.constant 0 : index
    %c0_26 = arith.constant 0 : index
    %37 = vector.load %arg2[%c4, %c0_25, %c0_26] : memref<5x128x128xbf16, #tpu.memory_space<vmem>>, vector<1x128x128xbf16>
    %38 = vector.shape_cast %37 : vector<1x128x128xbf16> to vector<128x128xbf16>
    %cst_27 = arith.constant dense<0.000000e+00> : vector<8x128xf32>
    %39 = tpu.matmul %36, %38, %cst_27 {dimension_numbers = #tpu.dot_dimension_numbers<[1], [0], [0], [1], [0, 0, 1, 1], [], []>} : vector<8x128xbf16>, vector<128x128xbf16>, vector<8x128xf32> -> vector<8x128xf32>
    %c4_28 = arith.constant 4 : index
    %c0_29 = arith.constant 0 : index
    %c0_30 = arith.constant 0 : index
    %40 = vector.load %arg3[%c4_28, %c0_29, %c0_30] : memref<5x1x128xf32, #tpu.memory_space<vmem>>, vector<1x1x128xf32>
    %41 = vector.shape_cast %40 : vector<1x1x128xf32> to vector<1x128xf32>
    %42 = vector.broadcast %41 : vector<1x128xf32> to vector<8x128xf32>
    %43 = arith.addf %39, %42 : vector<8x128xf32>
    %cst_31 = arith.constant 5.000000e-01 : f32
    %44 = vector.broadcast %cst_31 : f32 to vector<8x128xf32>
    %45 = arith.mulf %44, %43 : vector<8x128xf32>
    %46 = math.tanh %45 : vector<8x128xf32>
    %cst_32 = arith.constant 1.000000e+00 : f32
    %47 = vector.broadcast %cst_32 : f32 to vector<8x128xf32>
    %48 = arith.addf %46, %47 : vector<8x128xf32>
    %cst_33 = arith.constant 5.000000e-01 : f32
    %49 = vector.broadcast %cst_33 : f32 to vector<8x128xf32>
    %50 = arith.mulf %49, %48 : vector<8x128xf32>
    %c0_34 = arith.constant 0 : index
    %c0_35 = arith.constant 0 : index
    %51 = vector.load %arg4[%c0_34, %c0_35] : memref<8x128xf32, #tpu.memory_space<vmem>>, vector<8x128xf32>
    tpu.vector_store %arg4[%c0_34, %c0_35], %50 {strides = array<i32>} : memref<8x128xf32, #tpu.memory_space<vmem>>, vector<8x128xf32>,
    return
  }
  func.func @transform_0(%arg0: i32) -> (i32, i32) {
    %c0_i32 = arith.constant 0 : i32
    %c0_i32_0 = arith.constant 0 : i32
    return %arg0, %c0_i32 : i32, i32
  }
  func.func @transform_1(%arg0: i32) -> (i32, i32, i32) {
    %c0_i32 = arith.constant 0 : i32
    %c0_i32_0 = arith.constant 0 : i32
    %c0_i32_1 = arith.constant 0 : i32
    %c0_i32_2 = arith.constant 0 : i32
    return %c0_i32, %c0_i32_0, %c0_i32_1 : i32, i32, i32
  }
  func.func @transform_2(%arg0: i32) -> (i32, i32, i32) {
    %c0_i32 = arith.constant 0 : i32
    %c0_i32_0 = arith.constant 0 : i32
    %c0_i32_1 = arith.constant 0 : i32
    %c0_i32_2 = arith.constant 0 : i32
    return %c0_i32, %c0_i32_0, %c0_i32_1 : i32, i32, i32
  }
  func.func @transform_3(%arg0: i32) -> (i32, i32) {
    %c0_i32 = arith.constant 0 : i32
    %c0_i32_0 = arith.constant 0 : i32
    return %arg0, %c0_i32 : i32, i32
  }
}

</mosaic_0001>

<bundles_post_ra>
// kernel: actor_forward.1
= control target key start
LH: loop header
LB: loop body
LE: loop exit
PB: predicated region body
PF: predicated region fallthrough
CT: control target
= control target key end

     0   :  { %8 = vsyncpa [#allocation3], 0  ;;  %s710_s15 = smov [#allocation2]   ;;  %s711_s17 = smov 64   ;;  %s757_s0 = inlined_call_operand.vmem [shape: bf16[8,128], index: 0, kind: input, shape index: {}]   ;;  %s758_s1 = inlined_call_operand.hbm [shape: bf16[5,128,128], index: 1, kind: input, shape index: {}]   ;;  %s759_s2 = inlined_call_operand.vmem [shape: f32[5,1,128], index: 2, kind: input, shape index: {}]   ;;  %s760_s3 = inlined_call_operand.vmem [shape: f32[8,128], index: 3, kind: output, shape index: {}]  }
   0x1   :  { %s15_s14 = sshll.u32 %s758_s1, 4  ;;  %s17_s16 = sshll.u32 %s710_s15, 4  ;;  %s16_s14 = int_to_ptr.hbm [resolvable:$true] %s15_s14  ;;  %s18_s16 = int_to_ptr.vmem [resolvable:$true] %s17_s16 }
   0x2   :  { %s712_s18 = smov 4  }
   0x3   :  { %23 = dma.hbm_to_vmem [thread:$0]  %s16_s14, 5120, %s18_s16, [#allocation3], %s711_s17, %s711_s17, %s712_s18  }
   0x4   :  { %708 = dma.done.wait [#allocation3], 5120  }
   0x5   :  { %709 = vsyncadd [#allocation3], 4294962176  ;;  %v633_v0 = vld [vmem:[#allocation2 + $0x38] sm:$0xff]  ;;  %v632_v1 = vld [vmem:[#allocation2 + $0x30] sm:$0xff] }
   0x6   :  { %99 = vmatpush.bf16.msra.mxu0 %v633_v0  ;;  %v641_v2 = vld [vmem:[#allocation2 + $0x78] sm:$0xff]  ;;  %v640_v3 = vld [vmem:[#allocation2 + $0x70] sm:$0xff]  ;;  %v631_v4 = vld [vmem:[#allocation2 + $0x28] sm:$0xff] }
   0x7   :  { %184 = vmatpush.bf16.msra.mxu1 %v641_v2  ;;  %v639_v5 = vld [vmem:[#allocation2 + $0x68] sm:$0xff]  ;;  %v630_v6 = vld [vmem:[#allocation2 + $0x20] sm:$0xff]  ;;  %v629_v8 = vld [vmem:[#allocation2 + $0x18] sm:$0xff] }
   0x8   :  { %v638_v7 = vld [vmem:[#allocation2 + $0x60] sm:$0xff]  ;;  %v637_v9 = vld [vmem:[#allocation2 + $0x58] sm:$0xff]  ;;  %v628_v10 = vld [vmem:[#allocation2 + $0x10] sm:$0xff] }
   0x9   :  { %v627_v11 = vld [vmem:[#allocation2 + $0x8] sm:$0xff]  ;;  %v626_v12 = vld [vmem:[#allocation2] sm:$0xff]  ;;  %v636_v14 = vld [vmem:[#allocation2 + $0x50] sm:$0xff] }
   0xa   :  { %100 = vmatpush.bf16.msra.mxu0 %v632_v1  ;;  %v30_v13 = vld [vmem:[%s757_s0] sm:$0xf]  ;;  %v635_v15 = vld [vmem:[#allocation2 + $0x48] sm:$0xff]  ;;  %v649_v17 = vld [vmem:[#allocation2 + $0xb8] sm:$0xff] }
   0xb   :  { %185 = vmatpush.bf16.msra.mxu1 %v640_v3  ;;  %v634_v16 = vld [vmem:[#allocation2 + $0x40] sm:$0xff]  ;;  %269 = vmatpush.bf16.msra.mxu2 %v649_v17  ;;  %v648_v18 = vld [vmem:[#allocation2 + $0xb0] sm:$0xff]  ;;  %v647_v19 = vld [vmem:[#allocation2 + $0xa8] sm:$0xff] }
   0xc   :  { %v646_v20 = vld [vmem:[#allocation2 + $0xa0] sm:$0xff]  ;;  %v645_v21 = vld [vmem:[#allocation2 + $0x98] sm:$0xff]  ;;  %v644_v28 = vld [vmem:[#allocation2 + $0x90] sm:$0xff] }
   0xd   :  { %v669_v22 = vld [vmem:[%s759_s2] ss:$0 sm:$0xff]  ;;  %v643_v29 = vld [vmem:[#allocation2 + $0x88] sm:$0xff]  ;;  %v657_v31 = vld [vmem:[#allocation2 + $0xf8] sm:$0xff] }
   0xe   :  { %101 = vmatpush.bf16.msra.mxu0 %v631_v4  ;;  %v642_v30 = vld [vmem:[#allocation2 + $0x80] sm:$0xff]  ;;  %354 = vmatpush.bf16.msra.mxu3 %v657_v31  ;;  %v656_v32 = vld [vmem:[#allocation2 + $0xf0] sm:$0xff]  ;;  %v655_v33 = vld [vmem:[#allocation2 + $0xe8] sm:$0xff] }
   0xf   :  { %186 = vmatpush.bf16.msra.mxu1 %v639_v5  ;;  %270 = vmatpush.bf16.msra.mxu2 %v648_v18  ;;  %v654_v34 = vld [vmem:[#allocation2 + $0xe0] sm:$0xff]  ;;  %v653_v35 = vld [vmem:[#allocation2 + $0xd8] sm:$0xff]  ;;  %v652_v42 = vld [vmem:[#allocation2 + $0xd0] sm:$0xff] }
  0x10   :  { %v670_v36 = vld [vmem:[%s759_s2 + $0x1] ss:$0 sm:$0xff]  ;;  %v651_v43 = vld [vmem:[#allocation2 + $0xc8] sm:$0xff]  ;;  %v665_v45 = vld [vmem:[#allocation2 + $0x138] sm:$0xff] }
  0x11   :  { %v650_v44 = vld [vmem:[#allocation2 + $0xc0] sm:$0xff]  ;;  %v664_v46 = vld [vmem:[#allocation2 + $0x130] sm:$0xff]  ;;  %v663_v47 = vld [vmem:[#allocation2 + $0x128] sm:$0xff] }
  0x12   :  { %102 = vmatpush.bf16.msra.mxu0 %v630_v6  ;;  %355 = vmatpush.bf16.msra.mxu3 %v656_v32  ;;  %v662_v48 = vld [vmem:[#allocation2 + $0x120] sm:$0xff]  ;;  %v661_v49 = vld [vmem:[#allocation2 + $0x118] sm:$0xff]  ;;  %v660_v56 = vld [vmem:[#allocation2 + $0x110] sm:$0xff] }
  0x13   :  { %187 = vmatpush.bf16.msra.mxu1 %v638_v7  ;;  %271 = vmatpush.bf16.msra.mxu2 %v647_v19  ;;  %v671_v50 = vld [vmem:[%s759_s2 + $0x2] ss:$0 sm:$0xff]  ;;  %v659_v57 = vld [vmem:[#allocation2 + $0x108] sm:$0xff]  ;;  %v672_v59 = vld [vmem:[%s759_s2 + $0x3] ss:$0 sm:$0xff] }
  0x14   :  { %v658_v58 = vld [vmem:[#allocation2 + $0x100] sm:$0xff] }
  0x15   :  { %v673_v1 = vld [vmem:[%s759_s2 + $0x4] ss:$0 sm:$0xff] }
  0x16   :  { %103 = vmatpush.bf16.msra.mxu0 %v629_v8  ;;  %356 = vmatpush.bf16.msra.mxu3 %v655_v33 }
  0x17   :  { %188 = vmatpush.bf16.msra.mxu1 %v637_v9  ;;  %272 = vmatpush.bf16.msra.mxu2 %v646_v20 }
  0x1a   :  { %104 = vmatpush.bf16.msra.mxu0 %v628_v10  ;;  %357 = vmatpush.bf16.msra.mxu3 %v654_v34 }
  0x1b   :  { %189 = vmatpush.bf16.msra.mxu1 %v636_v14  ;;  %273 = vmatpush.bf16.msra.mxu2 %v645_v21 }
  0x1e   :  { %105 = vmatpush.bf16.msra.mxu0 %v627_v11  ;;  %358 = vmatpush.bf16.msra.mxu3 %v653_v35 }
  0x1f   :  { %190 = vmatpush.bf16.msra.mxu1 %v635_v15  ;;  %274 = vmatpush.bf16.msra.mxu2 %v644_v28 }
  0x22   :  { %106 = vmatpush.bf16.msra.mxu0 %v626_v12  ;;  %359 = vmatpush.bf16.msra.mxu3 %v652_v42 }
  0x23   :  { %191 = vmatpush.bf16.msra.mxu1 %v634_v16  ;;  %275 = vmatpush.bf16.msra.mxu2 %v643_v29 }
  0x25   :  { %107 = vmatmul.bf16.vlgmr.msra.gmra.mxu0 %v30_v13 }
  0x26   :  { %360 = vmatpush.bf16.msra.mxu3 %v651_v43  ;;  %439 = vmatpush.bf16.msrb.mxu0 %v665_v45 }
  0x27   :  { %276 = vmatpush.bf16.msra.mxu2 %v642_v30 }
  0x2a   :  { %361 = vmatpush.bf16.msra.mxu3 %v650_v44  ;;  %440 = vmatpush.bf16.msrb.mxu0 %v664_v46 }
  0x2e   :  { %441 = vmatpush.bf16.msrb.mxu0 %v663_v47 }
  0x32   :  { %442 = vmatpush.bf16.msrb.mxu0 %v662_v48 }
  0x36   :  { %443 = vmatpush.bf16.msrb.mxu0 %v661_v49 }
  0x3a   :  { %444 = vmatpush.bf16.msrb.mxu0 %v660_v56 }
  0x3e   :  { %445 = vmatpush.bf16.msrb.mxu0 %v659_v57 }
  0x42   :  { %446 = vmatpush.bf16.msrb.mxu0 %v658_v58 }
  0xa2   :  { %v108_v23 = vpop.f32.mrf.mxu0 }
  0xa3   :  { %v109_v24 = vadd.f32 %v669_v22, %v108_v23 }
  0xa5   :  { %674 = vtanh.f32 %v109_v24 }
  0xaa   :  { %v110_v25 = vpop.f32.mrf.mxu0 }
  0xab   :  { %v675_v26 = vpop.eup %674 }
  0xac   :  { %v113_v27 = vpack.c.bf16 %v675_v26, %v675_v26 }
  0xae   :  { %192 = vmatmul.bf16.vlgmr.msra.gmra.mxu1 %v113_v27 }
 0x12b   :  { %v193_v37 = vpop.f32.mrf.mxu1 }
 0x12c   :  { %v194_v38 = vadd.f32 %v670_v36, %v193_v37 }
 0x12e   :  { %676 = vtanh.f32 %v194_v38 }
 0x133   :  { %v195_v39 = vpop.f32.mrf.mxu1 }
 0x134   :  { %v677_v40 = vpop.eup %676 }
 0x135   :  { %v198_v41 = vpack.c.bf16 %v677_v40, %v677_v40 }
 0x137   :  { %277 = vmatmul.bf16.vlgmr.msra.gmra.mxu2 %v198_v41 }
 0x1ba   :  { %v278_v51 = vpop.f32.mrf.mxu2 }
 0x1bb   :  { %v279_v52 = vadd.f32 %v671_v50, %v278_v51 }
 0x1bd   :  { %678 = vtanh.f32 %v279_v52 }
 0x1c2   :  { %v280_v53 = vpop.f32.mrf.mxu2 }
 0x1c3   :  { %v679_v54 = vpop.eup %678 }
 0x1c4   :  { %v283_v55 = vpack.c.bf16 %v679_v54, %v679_v54 }
 0x1c6   :  { %362 = vmatmul.bf16.vlgmr.msra.gmra.mxu3 %v283_v55 }
 0x249   :  { %v363_v60 = vpop.f32.mrf.mxu3 }
 0x24a   :  { %v364_v61 = vadd.f32 %v672_v59, %v363_v60 }
 0x24c   :  { %680 = vtanh.f32 %v364_v61 }
 0x251   :  { %v365_v62 = vpop.f32.mrf.mxu3 }
 0x252   :  { %v681_v63 = vpop.eup %680 }
 0x253   :  { %v368_v0 = vpack.c.bf16 %v681_v63, %v681_v63 }
 0x255   :  { %447 = vmatmul.bf16.vlgmr.msrb.gmra.mxu0 %v368_v0 }
 0x2d2   :  { %v448_v2 = vpop.f32.mrf.mxu0 }
 0x2d3   :  { %v449_v3 = vadd.f32 %v673_v1, %v448_v2 }
 0x2d5   :  { %v452_v4 = vmul.f32 0.5, %v449_v3 }
 0x2d7   :  { %682 = vtanh.f32 %v452_v4 }
 0x2da   :  { %v450_v5 = vpop.f32.mrf.mxu0 }
 0x2dd   :  { %v683_v6 = vpop.eup %682 }
 0x2de   :  { %v454_v7 = vadd.f32 1.0, %v683_v6 }
 0x2e0   :  { %v455_v8 = vmul.f32 0.5, %v454_v7 }
 0x2e2   :  { %456 = vst [vmem:[%s760_s3] sm:$0xff] %v455_v8 }
 0x2e3   :  { %461 = vsyncpa [#allocation3], 1 }

</bundles_post_ra>
